<compile_context>
chip_gen: v7x
topology: tpu7x:2x2x1
jax: 0.10.0
libtpu: 0.0.40
codegen_flags: <defaults>
</compile_context>

<pallas_src>
import time
import contextlib

import jax
import jax.numpy as jnp
from jax.experimental import pallas as pl
from jax.experimental.pallas import tpu as pltpu


# ----------------------------------------------------------------------------
# Minimal stand-in for co.gtimer.Ctx (host-side timing side-effect only)
# ----------------------------------------------------------------------------
@contextlib.contextmanager
def gtimer_ctx(name):
    t0 = time.perf_counter()
    try:
        yield
    finally:
        t1 = time.perf_counter()
        # timing side-effect only; matches the PyTorch wrapper's behavior.
        _ = (name, t1 - t0)


# ----------------------------------------------------------------------------
# Pallas kernel: identity pass-through (the default tforward "compute")
# ----------------------------------------------------------------------------
def _identity_kernel(x_ref, o_ref):
    # Whole-tile VMEM copy; subclasses replace this body with real math.
    o_ref[...] = x_ref[...]


def _vmem_limit_bytes():
    """Per-generation VMEM budget with headroom (<= 48 MiB even on v7x)."""
    fallback = 64 * 1024 * 1024
    try:
        info = pltpu.get_tpu_info()
        cap = int(getattr(info, "vmem_capacity_bytes", fallback))
    except Exception:
        cap = fallback
    return min(cap // 2, 48 * 1024 * 1024)


def _tforward_identity(x):
    """Identity via a lane-dense tiled copy through VMEM (aliased in/out)."""
    orig_shape = x.shape
    dtype = x.dtype
    total = int(x.size)
    itemsize = jnp.dtype(dtype).itemsize

    if total == 0:
        return x

    # --- lane-dense slab: last dim a multiple of 128 that divides `total` ----
    lane_w = None
    for cand in (512, 256, 128):
        if total % cand == 0:
            lane_w = cand
            break
    if lane_w is None:
        # TODO(synk): element count not a multiple of 128 — handle the ragged
        # tail with a masked pltpu.store inside the kernel instead of falling
        # back; for the identity wrapper, returning x directly is exact.
        return x

    rows = total // lane_w

    # --- dtype-aware sublane multiple (8 f32 / 16 bf16 / 32 int8) ------------
    # TODO(synk): sub-byte packed dtypes (int4/fp8) may need larger minimums.
    sub = max(8, 32 // max(itemsize, 1))

    # --- tile size: cap ~2 MiB, aim for >= 8 grid steps -----------------------
    tile_bytes_cap = 2 * 1024 * 1024
    tr_cap = max(sub, (tile_bytes_cap // (lane_w * itemsize)) // sub * sub)

    if rows <= sub:
        # tiny input: single full-extent block (legal even if < (8,128))
        tr = rows
    else:
        tr = min(tr_cap, max(sub, (rows // 8) // sub * sub))
        steps = pl.cdiv(rows, tr)
        # best-effort: even step count so v7x's two TensorCores stay balanced
        if steps > 1 and steps % 2 == 1 and tr > sub:
            tr_alt = tr - sub
            if pl.cdiv(rows, tr_alt) % 2 == 0:
                tr = tr_alt

    grid = (pl.cdiv(rows, tr),)
    vmem_limit = _vmem_limit_bytes()

    x2d = x.reshape(rows, lane_w)
    y2d = pl.pallas_call(
        _identity_kernel,
        out_shape=jax.ShapeDtypeStruct((rows, lane_w), dtype),
        grid=grid,
        in_specs=[pl.BlockSpec((tr, lane_w), lambda i: (i, 0))],
        out_specs=pl.BlockSpec((tr, lane_w), lambda i: (i, 0)),
        input_output_aliases={0: 0},  # identity: output buffer == input buffer
        cost_estimate=pl.CostEstimate(
            flops=0, transcendentals=0, bytes_accessed=2 * total * itemsize
        ),
        compiler_params=pltpu.CompilerParams(
            dimension_semantics=("parallel",),
            vmem_limit_bytes=int(vmem_limit),
        ),
    )(x2d)

    return y2d.reshape(orig_shape)


_tforward_identity_jit = jax.jit(_tforward_identity)


# ----------------------------------------------------------------------------
# TimedModule equivalent
# ----------------------------------------------------------------------------
class TimedModule:
    def __init__(self, mod_name):
        self.mod_name = mod_name

    def tforward(self, x):
        # TODO(synk): base-class tforward is abstract in PyTorch (raises
        # "not implemented"); the aliased lane-dense identity copy is the
        # runnable default / template for subclasses' real compute.
        return _tforward_identity_jit(x)

    def forward(self, x):
        # torch.cuda.synchronize() -> block on inputs
        jax.block_until_ready(x)
        with gtimer_ctx(self.mod_name):
            y = self.tforward(x)
            # torch.cuda.synchronize() inside the timer ctx
            jax.block_until_ready(y)
        return y

    __call__ = forward


# ----------------------------------------------------------------------------
# Main
# ----------------------------------------------------------------------------
if __name__ == "__main__":
    key = jax.random.PRNGKey(0)

    # NCHW input, small shape (single full-extent block path)
    x = jax.random.normal(key, (2, 4, 16, 16), dtype=jnp.float32)
    mod = TimedModule("demo")
    y = jax.block_until_ready(mod(x))
    assert y.shape == x.shape and y.dtype == x.dtype
    assert bool(jnp.allclose(y, x)), "identity pass-through mismatch"

    # slightly larger input to exercise the multi-step pipelined path
    x2 = jax.random.normal(jax.random.PRNGKey(0), (4, 8, 32, 32), dtype=jnp.float32)
    y2 = jax.block_until_ready(mod(x2))
    assert bool(jnp.allclose(y2, x2)), "identity pass-through mismatch (tiled)"

    print("KERNEL_OK")
</pallas_src>

<mosaic_0001>
module attributes {stable_mosaic.version = 11 : i64} {
  func.func @_identity_kernel(%arg0: i32, %arg1: memref<4x512xf32, #tpu.memory_space<vmem>>, %arg2: memref<4x512xf32, #tpu.memory_space<vmem>>) attributes {dimension_semantics = [#tpu.dimension_semantics<parallel>], iteration_bounds = array<i64: 1>, scalar_prefetch = 0 : i64, scratch_operands = 0 : i64, tpu.core_type = #tpu.core_type<tc>, window_params = [{transform_indices = @transform_0, window_bounds = array<i64: 4, 512>}, {transform_indices = @transform_1, window_bounds = array<i64: 4, 512>}]} {
    %c0 = arith.constant 0 : index
    %c0_0 = arith.constant 0 : index
    %0 = vector.load %arg1[%c0, %c0_0] : memref<4x512xf32, #tpu.memory_space<vmem>>, vector<4x512xf32>
    %c0_1 = arith.constant 0 : index
    %c0_2 = arith.constant 0 : index
    %1 = vector.load %arg2[%c0_1, %c0_2] : memref<4x512xf32, #tpu.memory_space<vmem>>, vector<4x512xf32>
    tpu.vector_store %arg2[%c0_1, %c0_2], %0 {strides = array<i32>} : memref<4x512xf32, #tpu.memory_space<vmem>>, vector<4x512xf32>,
    return
  }
  func.func @transform_0(%arg0: i32) -> (i32, i32) {
    %c0_i32 = arith.constant 0 : i32
    %c0_i32_0 = arith.constant 0 : i32
    return %arg0, %c0_i32 : i32, i32
  }
  func.func @transform_1(%arg0: i32) -> (i32, i32) {
    %c0_i32 = arith.constant 0 : i32
    %c0_i32_0 = arith.constant 0 : i32
    return %arg0, %c0_i32 : i32, i32
  }
}

</mosaic_0001>

<bundles_post_ra>
// kernel: _tforward_identity.1
= control target key start
LH: loop header
LB: loop body
LE: loop exit
PB: predicated region body
PF: predicated region fallthrough
CT: control target
= control target key end

     0   :  { %s38_s0 = inlined_call_operand.vmem [shape: f32[4,512], index: 0, kind: input, shape index: {}, may-alias: {0,1}]   ;;  %s39_s1 = inlined_call_operand.vmem [shape: f32[4,512], index: 1, kind: output, shape index: {}, may-alias: {0,1}]  }
   0x1   :  { %v8_v0 = vld [vmem:[%s38_s0] sm:$0xff]  ;;  %v9_v1 = vld [vmem:[%s38_s0 + $0x8] sm:$0xff] }
   0x2   :  { %10 = vst [vmem:[%s39_s1] sm:$0xff] %v8_v0  ;;  %11 = vst [vmem:[%s39_s1 + $0x8] sm:$0xff] %v9_v1 }

</bundles_post_ra>
